<compile_context>
chip_gen: v6e
topology: v6e:2x2x1
jax: 0.10.0
libtpu: 0.0.40
codegen_flags: <defaults>
</compile_context>

<pallas_src>
import functools
import math

import jax
import jax.numpy as jnp
from jax.experimental import pallas as pl
from jax.experimental.pallas import tpu as pltpu


def rnabert_attention_kernel(
    hidden_ref,   # (1, S, D)   current batch row
    mask_ref,     # (1, 1, S)   additive attention mask for this batch row
    wq_ref,       # (H, D, Dh)  per-head query weight (resident, DMA'd once)
    bq_ref,       # (H, 1, Dh)
    wk_ref,       # (H, D, Dh)
    bk_ref,       # (H, 1, Dh)
    wv_ref,       # (H, D, Dh)
    bv_ref,       # (H, 1, Dh)
    wo_ref,       # (H, Dh, D)  per-head slice of the output projection
    bo_ref,       # (1, D)
    gamma_ref,    # (1, D)      LayerNorm weight
    beta_ref,     # (1, D)      LayerNorm bias
    out_ref,      # (1, S, D)   attention_output
    *,
    num_heads,
    scale,
    ln_eps,
):
    x = hidden_ref[0]                                       # (S, D)
    mask = mask_ref[0]                                       # (1, S) -> bcast over rows

    acc = jnp.zeros(x.shape, jnp.float32)                    # (S, D) f32 accumulator

    # Short, static head loop — all intermediates stay in VMEM/vregs.
    for h in range(num_heads):
        # Per-head projections (MXU, f32 accumulation). Fold 1/sqrt(Dh) into q.
        q = (jnp.dot(x, wq_ref[h], preferred_element_type=jnp.float32)
             + bq_ref[h]) * scale                            # (S, Dh)
        k = jnp.dot(x, wk_ref[h], preferred_element_type=jnp.float32) + bk_ref[h]
        v = jnp.dot(x, wv_ref[h], preferred_element_type=jnp.float32) + bv_ref[h]

        # Scaled dot-product attention for this head.
        s = jnp.einsum("qd,kd->qk", q, k,
                       preferred_element_type=jnp.float32)   # (S, S)
        s = s + mask                                         # additive mask

        m = jnp.max(s, axis=-1, keepdims=True)
        e = jnp.exp(s - m)
        p = e * pl.reciprocal(jnp.sum(e, axis=-1, keepdims=True), approx=True)
        # TODO(synk): attention_dropout / hidden_dropout are identity in eval
        # mode; training-mode dropout would use pltpu.prng_seed/prng_random_bits.

        ctx = jnp.dot(p, v, preferred_element_type=jnp.float32)       # (S, Dh)

        # Head h's contribution to the output projection.
        acc = acc + jnp.dot(ctx, wo_ref[h],
                            preferred_element_type=jnp.float32)       # (S, D)

    # Output dense bias + residual, then RnaBertLayerNorm (eps = 1e-12).
    y = acc + bo_ref[...] + x.astype(jnp.float32)
    u = jnp.mean(y, axis=-1, keepdims=True)
    var = jnp.mean((y - u) ** 2, axis=-1, keepdims=True)
    yn = (y - u) * jax.lax.rsqrt(var + ln_eps)
    out_ref[0] = (gamma_ref[...] * yn + beta_ref[...]).astype(out_ref.dtype)


def rnabert_attention(hidden_states, attention_mask, params, *, num_heads,
                      ln_eps=1e-12):
    """hidden_states: (B, S, D); attention_mask: additive, any shape
    reshapable to (B, 1, S) (e.g. HF-style (B, 1, 1, S)).  Weights use the
    x @ W + b convention (i.e. the transpose of torch.nn.Linear storage)."""
    B, S, D = hidden_states.shape
    H = num_heads
    Dh = D // H
    assert H * Dh == D
    f32 = jnp.float32

    # --- tiny, one-time weight repacks (no activation transposes) ---
    def per_head_cols(w):                       # (D, D) -> (H, D, Dh)
        return jnp.transpose(w.reshape(D, H, Dh), (1, 0, 2)).astype(f32)

    wq = per_head_cols(params["wq"])
    wk = per_head_cols(params["wk"])
    wv = per_head_cols(params["wv"])
    bq = params["bq"].reshape(H, 1, Dh).astype(f32)
    bk = params["bk"].reshape(H, 1, Dh).astype(f32)
    bv = params["bv"].reshape(H, 1, Dh).astype(f32)
    wo = params["wo"].reshape(H, Dh, D).astype(f32)     # pure view, no transpose
    bo = params["bo"].reshape(1, D).astype(f32)
    gamma = params["gamma"].reshape(1, D).astype(f32)
    beta = params["beta"].reshape(1, D).astype(f32)

    mask = attention_mask.reshape(B, 1, S).astype(f32)
    x = hidden_states.astype(f32)

    kernel = functools.partial(
        rnabert_attention_kernel,
        num_heads=H,
        scale=1.0 / math.sqrt(Dh),
        ln_eps=float(ln_eps),
    )

    # Per-batch blocks for activations; full (constant-index) blocks for all
    # weights so they are DMA'd once and stay resident across the whole grid.
    in_specs = [
        pl.BlockSpec((1, S, D), lambda b: (b, 0, 0)),   # hidden
        pl.BlockSpec((1, 1, S), lambda b: (b, 0, 0)),   # mask
        pl.BlockSpec((H, D, Dh), lambda b: (0, 0, 0)),  # wq
        pl.BlockSpec((H, 1, Dh), lambda b: (0, 0, 0)),  # bq
        pl.BlockSpec((H, D, Dh), lambda b: (0, 0, 0)),  # wk
        pl.BlockSpec((H, 1, Dh), lambda b: (0, 0, 0)),  # bk
        pl.BlockSpec((H, D, Dh), lambda b: (0, 0, 0)),  # wv
        pl.BlockSpec((H, 1, Dh), lambda b: (0, 0, 0)),  # bv
        pl.BlockSpec((H, Dh, D), lambda b: (0, 0, 0)),  # wo
        pl.BlockSpec((1, D), lambda b: (0, 0)),         # bo
        pl.BlockSpec((1, D), lambda b: (0, 0)),         # gamma
        pl.BlockSpec((1, D), lambda b: (0, 0)),         # beta
    ]
    out_specs = pl.BlockSpec((1, S, D), lambda b: (b, 0, 0))

    out = pl.pallas_call(
        kernel,
        out_shape=jax.ShapeDtypeStruct((B, S, D), hidden_states.dtype),
        grid_spec=pltpu.PrefetchScalarGridSpec(
            num_scalar_prefetch=0,
            grid=(B,),
            in_specs=in_specs,
            out_specs=out_specs,
        ),
        compiler_params=pltpu.CompilerParams(
            dimension_semantics=("parallel",)),
    )(x, mask, wq, bq, wk, bk, wv, bv, wo, bo, gamma, beta)
    return out


def rnabert_attention_ref(hidden, attention_mask, params, *, num_heads,
                          ln_eps=1e-12):
    """Pure-JAX reference mirroring the PyTorch forward (eval mode)."""
    B, S, D = hidden.shape
    H = num_heads
    Dh = D // H
    q = hidden @ params["wq"] + params["bq"]
    k = hidden @ params["wk"] + params["bk"]
    v = hidden @ params["wv"] + params["bv"]

    def split(t):
        return t.reshape(B, S, H, Dh).transpose(0, 2, 1, 3)

    qh, kh, vh = split(q), split(k), split(v)
    scores = jnp.einsum("bhqd,bhkd->bhqk", qh, kh) / math.sqrt(Dh)
    scores = scores + attention_mask.reshape(B, 1, 1, S)
    probs = jax.nn.softmax(scores, axis=-1)
    ctx = jnp.einsum("bhqk,bhkd->bhqd", probs, vh)
    ctx = ctx.transpose(0, 2, 1, 3).reshape(B, S, D)
    out = ctx @ params["wo"] + params["bo"]
    y = out + hidden
    u = y.mean(-1, keepdims=True)
    s = ((y - u) ** 2).mean(-1, keepdims=True)
    y = (y - u) / jnp.sqrt(s + ln_eps)
    return params["gamma"] * y + params["beta"]


if __name__ == "__main__":
    # Small shapes consistent with the module: batch=2, seq=8, hidden=32, heads=4.
    B, S, D, H = 2, 8, 32, 4
    key = jax.random.PRNGKey(0)
    ks = jax.random.split(key, 12)

    def rnd(k, shape, scale):
        return jax.random.normal(k, shape, dtype=jnp.float32) * scale

    wscale = 1.0 / math.sqrt(D)
    params = dict(
        wq=rnd(ks[0], (D, D), wscale), bq=rnd(ks[1], (D,), 0.02),
        wk=rnd(ks[2], (D, D), wscale), bk=rnd(ks[3], (D,), 0.02),
        wv=rnd(ks[4], (D, D), wscale), bv=rnd(ks[5], (D,), 0.02),
        wo=rnd(ks[6], (D, D), wscale), bo=rnd(ks[7], (D,), 0.02),
        gamma=jnp.ones((D,), jnp.float32) + rnd(ks[8], (D,), 0.05),
        beta=rnd(ks[9], (D,), 0.02),
    )
    hidden = jax.random.normal(ks[10], (B, S, D), dtype=jnp.float32)

    # HF-style additive extended mask (B, 1, 1, S): 0 = keep, -10000 = masked.
    lengths = jnp.array([S, S - 2])
    key_pos = jnp.arange(S)[None, :]
    mask_2d = jnp.where(key_pos < lengths[:, None], 0.0, -10000.0).astype(jnp.float32)
    attention_mask = mask_2d[:, None, None, :]

    out = jax.block_until_ready(
        rnabert_attention(hidden, attention_mask, params, num_heads=H))
    ref = jax.block_until_ready(
        rnabert_attention_ref(hidden, attention_mask, params, num_heads=H))

    assert out.shape == (B, S, D)
    assert jnp.allclose(out, ref, rtol=2e-2, atol=2e-2), float(
        jnp.max(jnp.abs(out - ref)))
    print("KERNEL_OK")
</pallas_src>

<mosaic_0001>
module attributes {stable_mosaic.version = 11 : i64} {
  func.func @rnabert_attention_kernel(%arg0: i32, %arg1: memref<1x8x32xf32, #tpu.memory_space<vmem>>, %arg2: memref<1x1x8xf32, #tpu.memory_space<vmem>>, %arg3: memref<4x32x8xf32, #tpu.memory_space<vmem>>, %arg4: memref<4x1x8xf32, #tpu.memory_space<vmem>>, %arg5: memref<4x32x8xf32, #tpu.memory_space<vmem>>, %arg6: memref<4x1x8xf32, #tpu.memory_space<vmem>>, %arg7: memref<4x32x8xf32, #tpu.memory_space<vmem>>, %arg8: memref<4x1x8xf32, #tpu.memory_space<vmem>>, %arg9: memref<4x8x32xf32, #tpu.memory_space<vmem>>, %arg10: memref<1x32xf32, #tpu.memory_space<vmem>>, %arg11: memref<1x32xf32, #tpu.memory_space<vmem>>, %arg12: memref<1x32xf32, #tpu.memory_space<vmem>>, %arg13: memref<1x8x32xf32, #tpu.memory_space<vmem>>) attributes {dimension_semantics = [#tpu.dimension_semantics<parallel>], iteration_bounds = array<i64: 2>, scalar_prefetch = 0 : i64, scratch_operands = 0 : i64, tpu.core_type = #tpu.core_type<tc>, window_params = [{transform_indices = @transform_0, window_bounds = array<i64: 1, 8, 32>}, {transform_indices = @transform_1, window_bounds = array<i64: 1, 1, 8>}, {pipeline_mode = #tpu.pipeline_mode<synchronous>, transform_indices = @transform_2, window_bounds = array<i64: 4, 32, 8>}, {pipeline_mode = #tpu.pipeline_mode<synchronous>, transform_indices = @transform_3, window_bounds = array<i64: 4, 1, 8>}, {pipeline_mode = #tpu.pipeline_mode<synchronous>, transform_indices = @transform_4, window_bounds = array<i64: 4, 32, 8>}, {pipeline_mode = #tpu.pipeline_mode<synchronous>, transform_indices = @transform_5, window_bounds = array<i64: 4, 1, 8>}, {pipeline_mode = #tpu.pipeline_mode<synchronous>, transform_indices = @transform_6, window_bounds = array<i64: 4, 32, 8>}, {pipeline_mode = #tpu.pipeline_mode<synchronous>, transform_indices = @transform_7, window_bounds = array<i64: 4, 1, 8>}, {pipeline_mode = #tpu.pipeline_mode<synchronous>, transform_indices = @transform_8, window_bounds = array<i64: 4, 8, 32>}, {pipeline_mode = #tpu.pipeline_mode<synchronous>, transform_indices = @transform_9, window_bounds = array<i64: 1, 32>}, {pipeline_mode = #tpu.pipeline_mode<synchronous>, transform_indices = @transform_10, window_bounds = array<i64: 1, 32>}, {pipeline_mode = #tpu.pipeline_mode<synchronous>, transform_indices = @transform_11, window_bounds = array<i64: 1, 32>}, {transform_indices = @transform_12, window_bounds = array<i64: 1, 8, 32>}]} {
    %c0 = arith.constant 0 : index
    %c0_0 = arith.constant 0 : index
    %c0_1 = arith.constant 0 : index
    %0 = vector.load %arg1[%c0, %c0_0, %c0_1] : memref<1x8x32xf32, #tpu.memory_space<vmem>>, vector<1x8x32xf32>
    %1 = vector.shape_cast %0 : vector<1x8x32xf32> to vector<8x32xf32>
    %c0_2 = arith.constant 0 : index
    %c0_3 = arith.constant 0 : index
    %c0_4 = arith.constant 0 : index
    %2 = vector.load %arg2[%c0_2, %c0_3, %c0_4] : memref<1x1x8xf32, #tpu.memory_space<vmem>>, vector<1x1x8xf32>
    %3 = vector.shape_cast %2 : vector<1x1x8xf32> to vector<1x8xf32>
    %cst = arith.constant 0.000000e+00 : f32
    %4 = vector.broadcast %cst : f32 to vector<8x32xf32>
    %c0_5 = arith.constant 0 : index
    %c0_6 = arith.constant 0 : index
    %c0_7 = arith.constant 0 : index
    %5 = vector.load %arg3[%c0_5, %c0_6, %c0_7] : memref<4x32x8xf32, #tpu.memory_space<vmem>>, vector<1x32x8xf32>
    %6 = vector.shape_cast %5 : vector<1x32x8xf32> to vector<32x8xf32>
    %cst_8 = arith.constant dense<0.000000e+00> : vector<8x8xf32>
    %7 = tpu.matmul %1, %6, %cst_8 {dimension_numbers = #tpu.dot_dimension_numbers<[1], [0], [0], [1], [0, 0, 1, 1], [], []>} : vector<8x32xf32>, vector<32x8xf32>, vector<8x8xf32> -> vector<8x8xf32>
    %c0_9 = arith.constant 0 : index
    %c0_10 = arith.constant 0 : index
    %c0_11 = arith.constant 0 : index
    %8 = vector.load %arg4[%c0_9, %c0_10, %c0_11] : memref<4x1x8xf32, #tpu.memory_space<vmem>>, vector<1x1x8xf32>
    %9 = vector.shape_cast %8 : vector<1x1x8xf32> to vector<1x8xf32>
    %10 = vector.broadcast %9 : vector<1x8xf32> to vector<8x8xf32>
    %11 = arith.addf %7, %10 : vector<8x8xf32>
    %cst_12 = arith.constant 0.353553385 : f32
    %12 = vector.broadcast %cst_12 : f32 to vector<8x8xf32>
    %13 = arith.mulf %11, %12 : vector<8x8xf32>
    %c0_13 = arith.constant 0 : index
    %c0_14 = arith.constant 0 : index
    %c0_15 = arith.constant 0 : index
    %14 = vector.load %arg5[%c0_13, %c0_14, %c0_15] : memref<4x32x8xf32, #tpu.memory_space<vmem>>, vector<1x32x8xf32>
    %15 = vector.shape_cast %14 : vector<1x32x8xf32> to vector<32x8xf32>
    %cst_16 = arith.constant dense<0.000000e+00> : vector<8x8xf32>
    %16 = tpu.matmul %1, %15, %cst_16 {dimension_numbers = #tpu.dot_dimension_numbers<[1], [0], [0], [1], [0, 0, 1, 1], [], []>} : vector<8x32xf32>, vector<32x8xf32>, vector<8x8xf32> -> vector<8x8xf32>
    %c0_17 = arith.constant 0 : index
    %c0_18 = arith.constant 0 : index
    %c0_19 = arith.constant 0 : index
    %17 = vector.load %arg6[%c0_17, %c0_18, %c0_19] : memref<4x1x8xf32, #tpu.memory_space<vmem>>, vector<1x1x8xf32>
    %18 = vector.shape_cast %17 : vector<1x1x8xf32> to vector<1x8xf32>
    %19 = vector.broadcast %18 : vector<1x8xf32> to vector<8x8xf32>
    %20 = arith.addf %16, %19 : vector<8x8xf32>
    %c0_20 = arith.constant 0 : index
    %c0_21 = arith.constant 0 : index
    %c0_22 = arith.constant 0 : index
    %21 = vector.load %arg7[%c0_20, %c0_21, %c0_22] : memref<4x32x8xf32, #tpu.memory_space<vmem>>, vector<1x32x8xf32>
    %22 = vector.shape_cast %21 : vector<1x32x8xf32> to vector<32x8xf32>
    %cst_23 = arith.constant dense<0.000000e+00> : vector<8x8xf32>
    %23 = tpu.matmul %1, %22, %cst_23 {dimension_numbers = #tpu.dot_dimension_numbers<[1], [0], [0], [1], [0, 0, 1, 1], [], []>} : vector<8x32xf32>, vector<32x8xf32>, vector<8x8xf32> -> vector<8x8xf32>
    %c0_24 = arith.constant 0 : index
    %c0_25 = arith.constant 0 : index
    %c0_26 = arith.constant 0 : index
    %24 = vector.load %arg8[%c0_24, %c0_25, %c0_26] : memref<4x1x8xf32, #tpu.memory_space<vmem>>, vector<1x1x8xf32>
    %25 = vector.shape_cast %24 : vector<1x1x8xf32> to vector<1x8xf32>
    %26 = vector.broadcast %25 : vector<1x8xf32> to vector<8x8xf32>
    %27 = arith.addf %23, %26 : vector<8x8xf32>
    "tpu.trace_start"() <{level = 10 : i32, message = "qd,kd->qk"}> : () -> ()
    %cst_27 = arith.constant dense<0.000000e+00> : vector<8x8xf32>
    %28 = tpu.matmul %13, %20, %cst_27 {dimension_numbers = #tpu.dot_dimension_numbers<[1], [1], [0], [0], [0, 0, 1, 0], [], []>} : vector<8x8xf32>, vector<8x8xf32>, vector<8x8xf32> -> vector<8x8xf32>
    "tpu.trace_stop"() : () -> ()
    %29 = vector.broadcast %3 : vector<1x8xf32> to vector<8x8xf32>
    %30 = arith.addf %28, %29 : vector<8x8xf32>
    %cst_28 = arith.constant dense<0xFF800000> : vector<8xf32>
    %31 = vector.multi_reduction <maximumf>, %30, %cst_28 [1] : vector<8x8xf32> to vector<8xf32>
    %32 = vector.shape_cast %31 : vector<8xf32> to vector<8x1xf32>
    %33 = vector.broadcast %32 : vector<8x1xf32> to vector<8x8xf32>
    %34 = arith.subf %30, %33 : vector<8x8xf32>
    %35 = math.exp %34 : vector<8x8xf32>
    %cst_29 = arith.constant dense<0.000000e+00> : vector<8xf32>
    %36 = vector.multi_reduction <add>, %35, %cst_29 [1] : vector<8x8xf32> to vector<8xf32>
    %37 = vector.shape_cast %36 : vector<8xf32> to vector<8x1xf32>
    %38 = tpu.reciprocal %37 {approx = true} : vector<8x1xf32> -> vector<8x1xf32>
    %39 = vector.broadcast %38 : vector<8x1xf32> to vector<8x8xf32>
    %40 = arith.mulf %35, %39 : vector<8x8xf32>
    %cst_30 = arith.constant dense<0.000000e+00> : vector<8x8xf32>
    %41 = tpu.matmul %40, %27, %cst_30 {dimension_numbers = #tpu.dot_dimension_numbers<[1], [0], [0], [1], [0, 0, 1, 1], [], []>} : vector<8x8xf32>, vector<8x8xf32>, vector<8x8xf32> -> vector<8x8xf32>
    %c0_31 = arith.constant 0 : index
    %c0_32 = arith.constant 0 : index
    %c0_33 = arith.constant 0 : index
    %42 = vector.load %arg9[%c0_31, %c0_32, %c0_33] : memref<4x8x32xf32, #tpu.memory_space<vmem>>, vector<1x8x32xf32>
    %43 = vector.shape_cast %42 : vector<1x8x32xf32> to vector<8x32xf32>
    %cst_34 = arith.constant dense<0.000000e+00> : vector<8x32xf32>
    %44 = tpu.matmul %41, %43, %cst_34 {dimension_numbers = #tpu.dot_dimension_numbers<[1], [0], [0], [1], [0, 0, 1, 1], [], []>} : vector<8x8xf32>, vector<8x32xf32>, vector<8x32xf32> -> vector<8x32xf32>
    %45 = arith.addf %4, %44 : vector<8x32xf32>
    %c1 = arith.constant 1 : index
    %c0_35 = arith.constant 0 : index
    %c0_36 = arith.constant 0 : index
    %46 = vector.load %arg3[%c1, %c0_35, %c0_36] : memref<4x32x8xf32, #tpu.memory_space<vmem>>, vector<1x32x8xf32>
    %47 = vector.shape_cast %46 : vector<1x32x8xf32> to vector<32x8xf32>
    %cst_37 = arith.constant dense<0.000000e+00> : vector<8x8xf32>
    %48 = tpu.matmul %1, %47, %cst_37 {dimension_numbers = #tpu.dot_dimension_numbers<[1], [0], [0], [1], [0, 0, 1, 1], [], []>} : vector<8x32xf32>, vector<32x8xf32>, vector<8x8xf32> -> vector<8x8xf32>
    %c1_38 = arith.constant 1 : index
    %c0_39 = arith.constant 0 : index
    %c0_40 = arith.constant 0 : index
    %49 = vector.load %arg4[%c1_38, %c0_39, %c0_40] : memref<4x1x8xf32, #tpu.memory_space<vmem>>, vector<1x1x8xf32>
    %50 = vector.shape_cast %49 : vector<1x1x8xf32> to vector<1x8xf32>
    %51 = vector.broadcast %50 : vector<1x8xf32> to vector<8x8xf32>
    %52 = arith.addf %48, %51 : vector<8x8xf32>
    %cst_41 = arith.constant 0.353553385 : f32
    %53 = vector.broadcast %cst_41 : f32 to vector<8x8xf32>
    %54 = arith.mulf %52, %53 : vector<8x8xf32>
    %c1_42 = arith.constant 1 : index
    %c0_43 = arith.constant 0 : index
    %c0_44 = arith.constant 0 : index
    %55 = vector.load %arg5[%c1_42, %c0_43, %c0_44] : memref<4x32x8xf32, #tpu.memory_space<vmem>>, vector<1x32x8xf32>
    %56 = vector.shape_cast %55 : vector<1x32x8xf32> to vector<32x8xf32>
    %cst_45 = arith.constant dense<0.000000e+00> : vector<8x8xf32>
    %57 = tpu.matmul %1, %56, %cst_45 {dimension_numbers = #tpu.dot_dimension_numbers<[1], [0], [0], [1], [0, 0, 1, 1], [], []>} : vector<8x32xf32>, vector<32x8xf32>, vector<8x8xf32> -> vector<8x8xf32>
    %c1_46 = arith.constant 1 : index
    %c0_47 = arith.constant 0 : index
    %c0_48 = arith.constant 0 : index
    %58 = vector.load %arg6[%c1_46, %c0_47, %c0_48] : memref<4x1x8xf32, #tpu.memory_space<vmem>>, vector<1x1x8xf32>
    %59 = vector.shape_cast %58 : vector<1x1x8xf32> to vector<1x8xf32>
    %60 = vector.broadcast %59 : vector<1x8xf32> to vector<8x8xf32>
    %61 = arith.addf %57, %60 : vector<8x8xf32>
    %c1_49 = arith.constant 1 : index
    %c0_50 = arith.constant 0 : index
    %c0_51 = arith.constant 0 : index
    %62 = vector.load %arg7[%c1_49, %c0_50, %c0_51] : memref<4x32x8xf32, #tpu.memory_space<vmem>>, vector<1x32x8xf32>
    %63 = vector.shape_cast %62 : vector<1x32x8xf32> to vector<32x8xf32>
    %cst_52 = arith.constant dense<0.000000e+00> : vector<8x8xf32>
    %64 = tpu.matmul %1, %63, %cst_52 {dimension_numbers = #tpu.dot_dimension_numbers<[1], [0], [0], [1], [0, 0, 1, 1], [], []>} : vector<8x32xf32>, vector<32x8xf32>, vector<8x8xf32> -> vector<8x8xf32>
    %c1_53 = arith.constant 1 : index
    %c0_54 = arith.constant 0 : index
    %c0_55 = arith.constant 0 : index
    %65 = vector.load %arg8[%c1_53, %c0_54, %c0_55] : memref<4x1x8xf32, #tpu.memory_space<vmem>>, vector<1x1x8xf32>
    %66 = vector.shape_cast %65 : vector<1x1x8xf32> to vector<1x8xf32>
    %67 = vector.broadcast %66 : vector<1x8xf32> to vector<8x8xf32>
    %68 = arith.addf %64, %67 : vector<8x8xf32>
    "tpu.trace_start"() <{level = 10 : i32, message = "qd,kd->qk"}> : () -> ()
    %cst_56 = arith.constant dense<0.000000e+00> : vector<8x8xf32>
    %69 = tpu.matmul %54, %61, %cst_56 {dimension_numbers = #tpu.dot_dimension_numbers<[1], [1], [0], [0], [0, 0, 1, 0], [], []>} : vector<8x8xf32>, vector<8x8xf32>, vector<8x8xf32> -> vector<8x8xf32>
    "tpu.trace_stop"() : () -> ()
    %70 = vector.broadcast %3 : vector<1x8xf32> to vector<8x8xf32>
    %71 = arith.addf %69, %70 : vector<8x8xf32>
    %cst_57 = arith.constant dense<0xFF800000> : vector<8xf32>
    %72 = vector.multi_reduction <maximumf>, %71, %cst_57 [1] : vector<8x8xf32> to vector<8xf32>
    %73 = vector.shape_cast %72 : vector<8xf32> to vector<8x1xf32>
    %74 = vector.broadcast %73 : vector<8x1xf32> to vector<8x8xf32>
    %75 = arith.subf %71, %74 : vector<8x8xf32>
    %76 = math.exp %75 : vector<8x8xf32>
    %cst_58 = arith.constant dense<0.000000e+00> : vector<8xf32>
    %77 = vector.multi_reduction <add>, %76, %cst_58 [1] : vector<8x8xf32> to vector<8xf32>
    %78 = vector.shape_cast %77 : vector<8xf32> to vector<8x1xf32>
    %79 = tpu.reciprocal %78 {approx = true} : vector<8x1xf32> -> vector<8x1xf32>
    %80 = vector.broadcast %79 : vector<8x1xf32> to vector<8x8xf32>
    %81 = arith.mulf %76, %80 : vector<8x8xf32>
    %cst_59 = arith.constant dense<0.000000e+00> : vector<8x8xf32>
    %82 = tpu.matmul %81, %68, %cst_59 {dimension_numbers = #tpu.dot_dimension_numbers<[1], [0], [0], [1], [0, 0, 1, 1], [], []>} : vector<8x8xf32>, vector<8x8xf32>, vector<8x8xf32> -> vector<8x8xf32>
    %c1_60 = arith.constant 1 : index
    %c0_61 = arith.constant 0 : index
    %c0_62 = arith.constant 0 : index
    %83 = vector.load %arg9[%c1_60, %c0_61, %c0_62] : memref<4x8x32xf32, #tpu.memory_space<vmem>>, vector<1x8x32xf32>
    %84 = vector.shape_cast %83 : vector<1x8x32xf32> to vector<8x32xf32>
    %cst_63 = arith.constant dense<0.000000e+00> : vector<8x32xf32>
    %85 = tpu.matmul %82, %84, %cst_63 {dimension_numbers = #tpu.dot_dimension_numbers<[1], [0], [0], [1], [0, 0, 1, 1], [], []>} : vector<8x8xf32>, vector<8x32xf32>, vector<8x32xf32> -> vector<8x32xf32>
    %86 = arith.addf %45, %85 : vector<8x32xf32>
    %c2 = arith.constant 2 : index
    %c0_64 = arith.constant 0 : index
    %c0_65 = arith.constant 0 : index
    %87 = vector.load %arg3[%c2, %c0_64, %c0_65] : memref<4x32x8xf32, #tpu.memory_space<vmem>>, vector<1x32x8xf32>
    %88 = vector.shape_cast %87 : vector<1x32x8xf32> to vector<32x8xf32>
    %cst_66 = arith.constant dense<0.000000e+00> : vector<8x8xf32>
    %89 = tpu.matmul %1, %88, %cst_66 {dimension_numbers = #tpu.dot_dimension_numbers<[1], [0], [0], [1], [0, 0, 1, 1], [], []>} : vector<8x32xf32>, vector<32x8xf32>, vector<8x8xf32> -> vector<8x8xf32>
    %c2_67 = arith.constant 2 : index
    %c0_68 = arith.constant 0 : index
    %c0_69 = arith.constant 0 : index
    %90 = vector.load %arg4[%c2_67, %c0_68, %c0_69] : memref<4x1x8xf32, #tpu.memory_space<vmem>>, vector<1x1x8xf32>
    %91 = vector.shape_cast %90 : vector<1x1x8xf32> to vector<1x8xf32>
    %92 = vector.broadcast %91 : vector<1x8xf32> to vector<8x8xf32>
    %93 = arith.addf %89, %92 : vector<8x8xf32>
    %cst_70 = arith.constant 0.353553385 : f32
    %94 = vector.broadcast %cst_70 : f32 to vector<8x8xf32>
    %95 = arith.mulf %93, %94 : vector<8x8xf32>
    %c2_71 = arith.constant 2 : index
    %c0_72 = arith.constant 0 : index
    %c0_73 = arith.constant 0 : index
    %96 = vector.load %arg5[%c2_71, %c0_72, %c0_73] : memref<4x32x8xf32, #tpu.memory_space<vmem>>, vector<1x32x8xf32>
    %97 = vector.shape_cast %96 : vector<1x32x8xf32> to vector<32x8xf32>
    %cst_74 = arith.constant dense<0.000000e+00> : vector<8x8xf32>
    %98 = tpu.matmul %1, %97, %cst_74 {dimension_numbers = #tpu.dot_dimension_numbers<[1], [0], [0], [1], [0, 0, 1, 1], [], []>} : vector<8x32xf32>, vector<32x8xf32>, vector<8x8xf32> -> vector<8x8xf32>
    %c2_75 = arith.constant 2 : index
    %c0_76 = arith.constant 0 : index
    %c0_77 = arith.constant 0 : index
    %99 = vector.load %arg6[%c2_75, %c0_76, %c0_77] : memref<4x1x8xf32, #tpu.memory_space<vmem>>, vector<1x1x8xf32>
    %100 = vector.shape_cast %99 : vector<1x1x8xf32> to vector<1x8xf32>
    %101 = vector.broadcast %100 : vector<1x8xf32> to vector<8x8xf32>
    %102 = arith.addf %98, %101 : vector<8x8xf32>
    %c2_78 = arith.constant 2 : index
    %c0_79 = arith.constant 0 : index
    %c0_80 = arith.constant 0 : index
    %103 = vector.load %arg7[%c2_78, %c0_79, %c0_80] : memref<4x32x8xf32, #tpu.memory_space<vmem>>, vector<1x32x8xf32>
    %104 = vector.shape_cast %103 : vector<1x32x8xf32> to vector<32x8xf32>
    %cst_81 = arith.constant dense<0.000000e+00> : vector<8x8xf32>
    %105 = tpu.matmul %1, %104, %cst_81 {dimension_numbers = #tpu.dot_dimension_numbers<[1], [0], [0], [1], [0, 0, 1, 1], [], []>} : vector<8x32xf32>, vector<32x8xf32>, vector<8x8xf32> -> vector<8x8xf32>
    %c2_82 = arith.constant 2 : index
    %c0_83 = arith.constant 0 : index
    %c0_84 = arith.constant 0 : index
    %106 = vector.load %arg8[%c2_82, %c0_83, %c0_84] : memref<4x1x8xf32, #tpu.memory_space<vmem>>, vector<1x1x8xf32>
    %107 = vector.shape_cast %106 : vector<1x1x8xf32> to vector<1x8xf32>
    %108 = vector.broadcast %107 : vector<1x8xf32> to vector<8x8xf32>
    %109 = arith.addf %105, %108 : vector<8x8xf32>
    "tpu.trace_start"() <{level = 10 : i32, message = "qd,kd->qk"}> : () -> ()
    %cst_85 = arith.constant dense<0.000000e+00> : vector<8x8xf32>
    %110 = tpu.matmul %95, %102, %cst_85 {dimension_numbers = #tpu.dot_dimension_numbers<[1], [1], [0], [0], [0, 0, 1, 0], [], []>} : vector<8x8xf32>, vector<8x8xf32>, vector<8x8xf32> -> vector<8x8xf32>
    "tpu.trace_stop"() : () -> ()
    %111 = vector.broadcast %3 : vector<1x8xf32> to vector<8x8xf32>
    %112 = arith.addf %110, %111 : vector<8x8xf32>
    %cst_86 = arith.constant dense<0xFF800000> : vector<8xf32>
    %113 = vector.multi_reduction <maximumf>, %112, %cst_86 [1] : vector<8x8xf32> to vector<8xf32>
    %114 = vector.shape_cast %113 : vector<8xf32> to vector<8x1xf32>
    %115 = vector.broadcast %114 : vector<8x1xf32> to vector<8x8xf32>
    %116 = arith.subf %112, %115 : vector<8x8xf32>
    %117 = math.exp %116 : vector<8x8xf32>
    %cst_87 = arith.constant dense<0.000000e+00> : vector<8xf32>
    %118 = vector.multi_reduction <add>, %117, %cst_87 [1] : vector<8x8xf32> to vector<8xf32>
    %119 = vector.shape_cast %118 : vector<8xf32> to vector<8x1xf32>
    %120 = tpu.reciprocal %119 {approx = true} : vector<8x1xf32> -> vector<8x1xf32>
    %121 = vector.broadcast %120 : vector<8x1xf32> to vector<8x8xf32>
    %122 = arith.mulf %117, %121 : vector<8x8xf32>
    %cst_88 = arith.constant dense<0.000000e+00> : vector<8x8xf32>
    %123 = tpu.matmul %122, %109, %cst_88 {dimension_numbers = #tpu.dot_dimension_numbers<[1], [0], [0], [1], [0, 0, 1, 1], [], []>} : vector<8x8xf32>, vector<8x8xf32>, vector<8x8xf32> -> vector<8x8xf32>
    %c2_89 = arith.constant 2 : index
    %c0_90 = arith.constant 0 : index
    %c0_91 = arith.constant 0 : index
    %124 = vector.load %arg9[%c2_89, %c0_90, %c0_91] : memref<4x8x32xf32, #tpu.memory_space<vmem>>, vector<1x8x32xf32>
    %125 = vector.shape_cast %124 : vector<1x8x32xf32> to vector<8x32xf32>
    %cst_92 = arith.constant dense<0.000000e+00> : vector<8x32xf32>
    %126 = tpu.matmul %123, %125, %cst_92 {dimension_numbers = #tpu.dot_dimension_numbers<[1], [0], [0], [1], [0, 0, 1, 1], [], []>} : vector<8x8xf32>, vector<8x32xf32>, vector<8x32xf32> -> vector<8x32xf32>
    %127 = arith.addf %86, %126 : vector<8x32xf32>
    %c3 = arith.constant 3 : index
    %c0_93 = arith.constant 0 : index
    %c0_94 = arith.constant 0 : index
    %128 = vector.load %arg3[%c3, %c0_93, %c0_94] : memref<4x32x8xf32, #tpu.memory_space<vmem>>, vector<1x32x8xf32>
    %129 = vector.shape_cast %128 : vector<1x32x8xf32> to vector<32x8xf32>
    %cst_95 = arith.constant dense<0.000000e+00> : vector<8x8xf32>
    %130 = tpu.matmul %1, %129, %cst_95 {dimension_numbers = #tpu.dot_dimension_numbers<[1], [0], [0], [1], [0, 0, 1, 1], [], []>} : vector<8x32xf32>, vector<32x8xf32>, vector<8x8xf32> -> vector<8x8xf32>
    %c3_96 = arith.constant 3 : index
    %c0_97 = arith.constant 0 : index
    %c0_98 = arith.constant 0 : index
    %131 = vector.load %arg4[%c3_96, %c0_97, %c0_98] : memref<4x1x8xf32, #tpu.memory_space<vmem>>, vector<1x1x8xf32>
    %132 = vector.shape_cast %131 : vector<1x1x8xf32> to vector<1x8xf32>
    %133 = vector.broadcast %132 : vector<1x8xf32> to vector<8x8xf32>
    %134 = arith.addf %130, %133 : vector<8x8xf32>
    %cst_99 = arith.constant 0.353553385 : f32
    %135 = vector.broadcast %cst_99 : f32 to vector<8x8xf32>
    %136 = arith.mulf %134, %135 : vector<8x8xf32>
    %c3_100 = arith.constant 3 : index
    %c0_101 = arith.constant 0 : index
    %c0_102 = arith.constant 0 : index
    %137 = vector.load %arg5[%c3_100, %c0_101, %c0_102] : memref<4x32x8xf32, #tpu.memory_space<vmem>>, vector<1x32x8xf32>
    %138 = vector.shape_cast %137 : vector<1x32x8xf32> to vector<32x8xf32>
    %cst_103 = arith.constant dense<0.000000e+00> : vector<8x8xf32>
    %139 = tpu.matmul %1, %138, %cst_103 {dimension_numbers = #tpu.dot_dimension_numbers<[1], [0], [0], [1], [0, 0, 1, 1], [], []>} : vector<8x32xf32>, vector<32x8xf32>, vector<8x8xf32> -> vector<8x8xf32>
    %c3_104 = arith.constant 3 : index
    %c0_105 = arith.constant 0 : index
    %c0_106 = arith.constant 0 : index
    %140 = vector.load %arg6[%c3_104, %c0_105, %c0_106] : memref<4x1x8xf32, #tpu.memory_space<vmem>>, vector<1x1x8xf32>
    %141 = vector.shape_cast %140 : vector<1x1x8xf32> to vector<1x8xf32>
    %142 = vector.broadcast %141 : vector<1x8xf32> to vector<8x8xf32>
    %143 = arith.addf %139, %142 : vector<8x8xf32>
    %c3_107 = arith.constant 3 : index
    %c0_108 = arith.constant 0 : index
    %c0_109 = arith.constant 0 : index
    %144 = vector.load %arg7[%c3_107, %c0_108, %c0_109] : memref<4x32x8xf32, #tpu.memory_space<vmem>>, vector<1x32x8xf32>
    %145 = vector.shape_cast %144 : vector<1x32x8xf32> to vector<32x8xf32>
    %cst_110 = arith.constant dense<0.000000e+00> : vector<8x8xf32>
    %146 = tpu.matmul %1, %145, %cst_110 {dimension_numbers = #tpu.dot_dimension_numbers<[1], [0], [0], [1], [0, 0, 1, 1], [], []>} : vector<8x32xf32>, vector<32x8xf32>, vector<8x8xf32> -> vector<8x8xf32>
    %c3_111 = arith.constant 3 : index
    %c0_112 = arith.constant 0 : index
    %c0_113 = arith.constant 0 : index
    %147 = vector.load %arg8[%c3_111, %c0_112, %c0_113] : memref<4x1x8xf32, #tpu.memory_space<vmem>>, vector<1x1x8xf32>
    %148 = vector.shape_cast %147 : vector<1x1x8xf32> to vector<1x8xf32>
    %149 = vector.broadcast %148 : vector<1x8xf32> to vector<8x8xf32>
    %150 = arith.addf %146, %149 : vector<8x8xf32>
    "tpu.trace_start"() <{level = 10 : i32, message = "qd,kd->qk"}> : () -> ()
    %cst_114 = arith.constant dense<0.000000e+00> : vector<8x8xf32>
    %151 = tpu.matmul %136, %143, %cst_114 {dimension_numbers = #tpu.dot_dimension_numbers<[1], [1], [0], [0], [0, 0, 1, 0], [], []>} : vector<8x8xf32>, vector<8x8xf32>, vector<8x8xf32> -> vector<8x8xf32>
    "tpu.trace_stop"() : () -> ()
    %152 = vector.broadcast %3 : vector<1x8xf32> to vector<8x8xf32>
    %153 = arith.addf %151, %152 : vector<8x8xf32>
    %cst_115 = arith.constant dense<0xFF800000> : vector<8xf32>
    %154 = vector.multi_reduction <maximumf>, %153, %cst_115 [1] : vector<8x8xf32> to vector<8xf32>
    %155 = vector.shape_cast %154 : vector<8xf32> to vector<8x1xf32>
    %156 = vector.broadcast %155 : vector<8x1xf32> to vector<8x8xf32>
    %157 = arith.subf %153, %156 : vector<8x8xf32>
    %158 = math.exp %157 : vector<8x8xf32>
    %cst_116 = arith.constant dense<0.000000e+00> : vector<8xf32>
    %159 = vector.multi_reduction <add>, %158, %cst_116 [1] : vector<8x8xf32> to vector<8xf32>
    %160 = vector.shape_cast %159 : vector<8xf32> to vector<8x1xf32>
    %161 = tpu.reciprocal %160 {approx = true} : vector<8x1xf32> -> vector<8x1xf32>
    %162 = vector.broadcast %161 : vector<8x1xf32> to vector<8x8xf32>
    %163 = arith.mulf %158, %162 : vector<8x8xf32>
    %cst_117 = arith.constant dense<0.000000e+00> : vector<8x8xf32>
    %164 = tpu.matmul %163, %150, %cst_117 {dimension_numbers = #tpu.dot_dimension_numbers<[1], [0], [0], [1], [0, 0, 1, 1], [], []>} : vector<8x8xf32>, vector<8x8xf32>, vector<8x8xf32> -> vector<8x8xf32>
    %c3_118 = arith.constant 3 : index
    %c0_119 = arith.constant 0 : index
    %c0_120 = arith.constant 0 : index
    %165 = vector.load %arg9[%c3_118, %c0_119, %c0_120] : memref<4x8x32xf32, #tpu.memory_space<vmem>>, vector<1x8x32xf32>
    %166 = vector.shape_cast %165 : vector<1x8x32xf32> to vector<8x32xf32>
    %cst_121 = arith.constant dense<0.000000e+00> : vector<8x32xf32>
    %167 = tpu.matmul %164, %166, %cst_121 {dimension_numbers = #tpu.dot_dimension_numbers<[1], [0], [0], [1], [0, 0, 1, 1], [], []>} : vector<8x8xf32>, vector<8x32xf32>, vector<8x32xf32> -> vector<8x32xf32>
    %168 = arith.addf %127, %167 : vector<8x32xf32>
    %c0_122 = arith.constant 0 : index
    %c0_123 = arith.constant 0 : index
    %169 = vector.load %arg10[%c0_122, %c0_123] : memref<1x32xf32, #tpu.memory_space<vmem>>, vector<1x32xf32>
    %170 = vector.broadcast %169 : vector<1x32xf32> to vector<8x32xf32>
    %171 = arith.addf %168, %170 : vector<8x32xf32>
    %172 = arith.addf %171, %1 : vector<8x32xf32>
    %cst_124 = arith.constant dense<0.000000e+00> : vector<8xf32>
    %173 = vector.multi_reduction <add>, %172, %cst_124 [1] : vector<8x32xf32> to vector<8xf32>
    %174 = vector.shape_cast %173 : vector<8xf32> to vector<8x1xf32>
    %cst_125 = arith.constant 3.200000e+01 : f32
    %175 = vector.broadcast %cst_125 : f32 to vector<8x1xf32>
    %176 = arith.divf %174, %175 : vector<8x1xf32>
    %177 = vector.broadcast %176 : vector<8x1xf32> to vector<8x32xf32>
    %178 = arith.subf %172, %177 : vector<8x32xf32>
    %179 = arith.mulf %178, %178 : vector<8x32xf32>
    %cst_126 = arith.constant dense<0.000000e+00> : vector<8xf32>
    %180 = vector.multi_reduction <add>, %179, %cst_126 [1] : vector<8x32xf32> to vector<8xf32>
    %181 = vector.shape_cast %180 : vector<8xf32> to vector<8x1xf32>
    %cst_127 = arith.constant 3.200000e+01 : f32
    %182 = vector.broadcast %cst_127 : f32 to vector<8x1xf32>
    %183 = arith.divf %181, %182 : vector<8x1xf32>
    %184 = vector.broadcast %176 : vector<8x1xf32> to vector<8x32xf32>
    %185 = arith.subf %172, %184 : vector<8x32xf32>
    %cst_128 = arith.constant 9.99999996E-13 : f32
    %186 = vector.broadcast %cst_128 : f32 to vector<8x1xf32>
    %187 = arith.addf %183, %186 : vector<8x1xf32>
    %188 = math.rsqrt %187 : vector<8x1xf32>
    %189 = vector.broadcast %188 : vector<8x1xf32> to vector<8x32xf32>
    %190 = arith.mulf %185, %189 : vector<8x32xf32>
    %c0_129 = arith.constant 0 : index
    %c0_130 = arith.constant 0 : index
    %191 = vector.load %arg11[%c0_129, %c0_130] : memref<1x32xf32, #tpu.memory_space<vmem>>, vector<1x32xf32>
    %192 = vector.broadcast %191 : vector<1x32xf32> to vector<8x32xf32>
    %193 = arith.mulf %192, %190 : vector<8x32xf32>
    %c0_131 = arith.constant 0 : index
    %c0_132 = arith.constant 0 : index
    %194 = vector.load %arg12[%c0_131, %c0_132] : memref<1x32xf32, #tpu.memory_space<vmem>>, vector<1x32xf32>
    %195 = vector.broadcast %194 : vector<1x32xf32> to vector<8x32xf32>
    %196 = arith.addf %193, %195 : vector<8x32xf32>
    %c0_133 = arith.constant 0 : index
    %c0_134 = arith.constant 0 : index
    %c0_135 = arith.constant 0 : index
    %197 = vector.load %arg13[%c0_133, %c0_134, %c0_135] : memref<1x8x32xf32, #tpu.memory_space<vmem>>, vector<1x8x32xf32>
    %198 = vector.shape_cast %197 : vector<1x8x32xf32> to vector<8x32xf32>
    %199 = vector.shape_cast %196 : vector<8x32xf32> to vector<1x8x32xf32>
    tpu.vector_store %arg13[%c0_133, %c0_134, %c0_135], %199 {strides = array<i32>} : memref<1x8x32xf32, #tpu.memory_space<vmem>>, vector<1x8x32xf32>,
    return
  }
  func.func @transform_0(%arg0: i32) -> (i32, i32, i32) {
    %c0_i32 = arith.constant 0 : i32
    %c0_i32_0 = arith.constant 0 : i32
    %c0_i32_1 = arith.constant 0 : i32
    return %arg0, %c0_i32, %c0_i32_0 : i32, i32, i32
  }
  func.func @transform_1(%arg0: i32) -> (i32, i32, i32) {
    %c0_i32 = arith.constant 0 : i32
    %c0_i32_0 = arith.constant 0 : i32
    %c0_i32_1 = arith.constant 0 : i32
    return %arg0, %c0_i32, %c0_i32_0 : i32, i32, i32
  }
  func.func @transform_2(%arg0: i32) -> (i32, i32, i32) {
    %c0_i32 = arith.constant 0 : i32
    %c0_i32_0 = arith.constant 0 : i32
    %c0_i32_1 = arith.constant 0 : i32
    %c0_i32_2 = arith.constant 0 : i32
    return %c0_i32, %c0_i32_0, %c0_i32_1 : i32, i32, i32
  }
  func.func @transform_3(%arg0: i32) -> (i32, i32, i32) {
    %c0_i32 = arith.constant 0 : i32
    %c0_i32_0 = arith.constant 0 : i32
    %c0_i32_1 = arith.constant 0 : i32
    %c0_i32_2 = arith.constant 0 : i32
    return %c0_i32, %c0_i32_0, %c0_i32_1 : i32, i32, i32
  }
  func.func @transform_4(%arg0: i32) -> (i32, i32, i32) {
    %c0_i32 = arith.constant 0 : i32
    %c0_i32_0 = arith.constant 0 : i32
    %c0_i32_1 = arith.constant 0 : i32
    %c0_i32_2 = arith.constant 0 : i32
    return %c0_i32, %c0_i32_0, %c0_i32_1 : i32, i32, i32
  }
  func.func @transform_5(%arg0: i32) -> (i32, i32, i32) {
    %c0_i32 = arith.constant 0 : i32
    %c0_i32_0 = arith.constant 0 : i32
    %c0_i32_1 = arith.constant 0 : i32
    %c0_i32_2 = arith.constant 0 : i32
    return %c0_i32, %c0_i32_0, %c0_i32_1 : i32, i32, i32
  }
  func.func @transform_6(%arg0: i32) -> (i32, i32, i32) {
    %c0_i32 = arith.constant 0 : i32
    %c0_i32_0 = arith.constant 0 : i32
    %c0_i32_1 = arith.constant 0 : i32
    %c0_i32_2 = arith.constant 0 : i32
    return %c0_i32, %c0_i32_0, %c0_i32_1 : i32, i32, i32
  }
  func.func @transform_7(%arg0: i32) -> (i32, i32, i32) {
    %c0_i32 = arith.constant 0 : i32
    %c0_i32_0 = arith.constant 0 : i32
    %c0_i32_1 = arith.constant 0 : i32
    %c0_i32_2 = arith.constant 0 : i32
    return %c0_i32, %c0_i32_0, %c0_i32_1 : i32, i32, i32
  }
  func.func @transform_8(%arg0: i32) -> (i32, i32, i32) {
    %c0_i32 = arith.constant 0 : i32
    %c0_i32_0 = arith.constant 0 : i32
    %c0_i32_1 = arith.constant 0 : i32
    %c0_i32_2 = arith.constant 0 : i32
    return %c0_i32, %c0_i32_0, %c0_i32_1 : i32, i32, i32
  }
  func.func @transform_9(%arg0: i32) -> (i32, i32) {
    %c0_i32 = arith.constant 0 : i32
    %c0_i32_0 = arith.constant 0 : i32
    %c0_i32_1 = arith.constant 0 : i32
    return %c0_i32, %c0_i32_0 : i32, i32
  }
  func.func @transform_10(%arg0: i32) -> (i32, i32) {
    %c0_i32 = arith.constant 0 : i32
    %c0_i32_0 = arith.constant 0 : i32
    %c0_i32_1 = arith.constant 0 : i32
    return %c0_i32, %c0_i32_0 : i32, i32
  }
  func.func @transform_11(%arg0: i32) -> (i32, i32) {
    %c0_i32 = arith.constant 0 : i32
    %c0_i32_0 = arith.constant 0 : i32
    %c0_i32_1 = arith.constant 0 : i32
    return %c0_i32, %c0_i32_0 : i32, i32
  }
  func.func @transform_12(%arg0: i32) -> (i32, i32, i32) {
    %c0_i32 = arith.constant 0 : i32
    %c0_i32_0 = arith.constant 0 : i32
    %c0_i32_1 = arith.constant 0 : i32
    return %arg0, %c0_i32, %c0_i32_0 : i32, i32, i32
  }
}

</mosaic_0001>

<bundles_post_ra>
// kernel: tpu_custom_call.1
= control target key start
LH: loop header
LB: loop body
LE: loop exit
PB: predicated region body
PF: predicated region fallthrough
CT: control target
= control target key end

     0   :  { %s3529_s0 = inlined_call_operand.vmem [shape: f32[2,8,32], index: 0, kind: input, shape index: {}]   ;;  %s3530_s1 = inlined_call_operand.vmem [shape: f32[2,1,8], index: 1, kind: input, shape index: {}]   ;;  %s3531_s2 = inlined_call_operand.vmem [shape: f32[4,32,8], index: 2, kind: input, shape index: {}]   ;;  %s3532_s3 = inlined_call_operand.vmem [shape: f32[4,1,8], index: 3, kind: input, shape index: {}]   ;;  %s3533_s4 = inlined_call_operand.vmem [shape: f32[4,32,8], index: 4, kind: input, shape index: {}]   ;;  %s3534_s5 = inlined_call_operand.vmem [shape: f32[4,1,8], index: 5, kind: input, shape index: {}]   ;;  %s3535_s6 = inlined_call_operand.vmem [shape: f32[4,32,8], index: 6, kind: input, shape index: {}]   ;;  %s3536_s7 = inlined_call_operand.vmem [shape: f32[4,1,8], index: 7, kind: input, shape index: {}]   ;;  %s3537_s8 = inlined_call_operand.vmem [shape: f32[4,8,32], index: 8, kind: input, shape index: {}]   ;;  %s3538_s9 = inlined_call_operand.vmem [shape: f32[1,32], index: 9, kind: input, shape index: {}]   ;;  %s3539_s10 = inlined_call_operand.vmem [shape: f32[1,32], index: 10, kind: input, shape index: {}]   ;;  %s3540_s11 = inlined_call_operand.vmem [shape: f32[1,32], index: 11, kind: input, shape index: {}]   ;;  %s3541_s12 = inlined_call_operand.hbm [shape: f32[2,8,32], index: 12, kind: output, shape index: {}]  }
   0x1   :  { %3542 = sst [smem:[#allocation6_spill]] %s3529_s0 }
   0x2   :  { %3543 = sst [smem:[#allocation7_spill]] %s3530_s1 }
   0x3   :  { %3544 = sst [smem:[#allocation8_spill]] %s3531_s2 }
   0x4   :  { %17 = vsyncpa [#allocation3], 0 }
   0x5   :  { %19 = vsyncpa [#allocation3 + $0x1], 0  ;;  %s3060_s21 = smov 0   ;;  %s3062_s22 = smov 0  }
   0x6   :  { %s3064_s23 = smov 0   ;;  %s3066_s24 = smov 0  }
   0x7 LB: > { %s3081_s25 = sadd.s32 4294967295, %s2990_s24   ;;  %s2493_s26 = sadd.s32 4294967294, %s2990_s24   ;;  %s2990_s24 = sphi %s3066_s24, %s3555_s24   ;;  %s2986_s23 = sphi %s3064_s23, %s3554_s23   ;;  %s2982_s22 = sphi %s3062_s22, %s3553_s22   ;;  %s2978_s21 = sphi %s3060_s21, %s3552_s21  }
   0x8   : > { %s3085_s27 = sadd.s32 1, %s2990_s24   ;;  %s294_s28 = sadd.s32 1, %s2986_s23 }
   0x9   : > { %s291_s29 = ssub.s32 %s2990_s24, %s3085_s27  ;;  %p304_p0 = scmp.ne.s32.totalorder %s2986_s23, %s2982_s22 }
   0xa   : > { %p292_p1 = scmp.eq.s32.totalorder %s291_s29, 0  ;;  %p305_p2 = scmp.eq.s32.totalorder %s3081_s25, 1 }
   0xb   : > { %p310_p3 = scmp.ne.s32.totalorder %s2982_s22, %s2978_s21  ;;  %p311_p4 = scmp.eq.s32.totalorder %s2493_s26, 1 }
   0xc   : > { %s3096_s30 = scalar_select %p292_p1, %s2986_s23, %s294_s28  }
   0xd   : > { %p3098_p5 = por %p305_p2, %p304_p0  ;;  %p3102_p6 = por %p311_p4, %p310_p3 }
   0xe   : > { %3545 = sst [smem:[#allocation5_spill]] %s3096_s30  ;;  %p2496_p7 = scmp.ge.s32.totalorder %s2990_s24, 1 }
   0xf   : > { %p372_p8 = scmp.lt.s32.totalorder %s2990_s24, 3 }
  0x11   : > { %p373_p9 = pnand %p2496_p7, %p372_p8 }
  0x12   : > { %s3548_s2 = sld [smem:[#allocation8_spill]] (!%p373_p9)  ;;  %p416_p10 = scmp.lt.s32.totalorder (!%p373_p9), %s3081_s25, 1 }
  0x13   : > { %376 = sbr.rel (%p373_p9) target bundleno = 3976 (0xf88), region = 68  ;;  %s3549_s0 = sld [smem:[#allocation6_spill]] (!%p373_p9) }
  0x14   : > { %s3550_s1 = sld [smem:[#allocation7_spill]] (!%p373_p9)  ;;  %s2592_s26 = sshll.u32 (!%p373_p9), %s3081_s25, 7 }
  0x15   : > { %s2994_s18 = smov (!%p373_p9), [#allocation2]  }
  0x18   : > { %v428_v0 = vld [vmem:[%s3548_s2 + $0x18] sm:$0xff]  ;;  %v2992_v2 = vmov 0.0   ;;  %v427_v3 = vld [vmem:[%s3548_s2 + $0x10] sm:$0xff]  ;;  %s3124_s29 = scalar_select %p416_p10, %s3081_s25, 1  ;;  %v426_v5 = vld [vmem:[%s3548_s2 + $0x8] sm:$0xff]  ;;  %vm436_vm0 = vcmask 261120  }
  0x19   : > { %v514_v1 = vld [vmem:[%s3533_s4 + $0x18] sm:$0xff]  ;;  %2679 = vmatprep.subr.mxu0 %v2992_v2  ;;  %2690 = vmatprep.subr.mxu1 %v2992_v2  ;;  %v513_v4 = vld [vmem:[%s3533_s4 + $0x10] sm:$0xff]  ;;  %v512_v6 = vld [vmem:[%s3533_s4 + $0x8] sm:$0xff]  ;;  %vm2993_vm1 = vmmov 0   ;;  %vm679_vm2 = vcmask 64512  }
  0x1a   : > { %2680 = vmatpush3.msra.mxu0 %v428_v0  ;;  %2691 = vmatpush3.msra.mxu1 %v514_v1  ;;  %s2498_s19 = sshll.u32 %s3124_s29, 3  ;;  %v425_v7 = vld [vmem:[%s3548_s2] sm:$0xff]  ;;  %v595_v19 = vld [vmem:[%s3535_s6 + $0x18] sm:$0xff]  ;;  %v594_v20 = vld [vmem:[%s3535_s6 + $0x10] sm:$0xff]  ;;  %s422_s28 = scalar_lea.vmem %s3550_s1, %s3124_s29 }
  0x1b   : > { %2681 = vmatprep.subr.mxu0 %v2992_v2  ;;  %2692 = vmatprep.subr.mxu1 %v2992_v2  ;;  %s419_s15 = scalar_lea.vmem %s3549_s0, %s2498_s19  ;;  %v511_v8 = vld [vmem:[%s3533_s4] sm:$0xff]  ;;  %v593_v21 = vld [vmem:[%s3535_s6 + $0x8] sm:$0xff]  ;;  %v2512_v35 = vld [vmem:[%s3548_s2 + $0x38] sm:$0xff]  ;;  %s413_s29 = sand.u32 1, %s2982_s22  }
  0x1c   : > { %2682 = vmatpush3.msra.mxu0 %v427_v3  ;;  %2693 = vmatpush3.msra.mxu1 %v513_v4  ;;  %v3148_v9 = vld [vmem:[%s419_s15] sm:$0xff]  ;;  %v2511_v38 = vld [vmem:[%s3548_s2 + $0x30] sm:$0xff]  ;;  %v2510_v39 = vld [vmem:[%s3548_s2 + $0x28] sm:$0xff]  ;;  %s2497_s17 = sshll.u32 %s413_s29, 3  ;;  %s2423_s1 = scalar_lea.hbm %s3541_s12, %s2592_s26 }
  0x1d   : > { %2683 = vmatprep.subr.mxu0 %v2992_v2  ;;  %2694 = vmatprep.subr.mxu1 %v2992_v2  ;;  %v2499_v10 = vld [vmem:[%s3532_s3] ss:$0 sm:$0xff]  ;;  %v2519_v44 = vld [vmem:[%s3533_s4 + $0x38] sm:$0xff]  ;;  %v2518_v45 = vld [vmem:[%s3533_s4 + $0x30] sm:$0xff]  ;;  %s2934_s19 = sshll.u32 %s2994_s18, 4  ;;  %s2935_s19 = int_to_ptr.vmem [resolvable:$false] %s2934_s19 }
  0x1e   : > { %2684 = vmatpush3.msra.mxu0 %v426_v5  ;;  %2695 = vmatpush3.msra.mxu1 %v512_v6  ;;  %v2501_v11 = vld [vmem:[%s3534_s5] ss:$0 sm:$0xff]  ;;  %v2517_v46 = vld [vmem:[%s3533_s4 + $0x28] sm:$0xff]  ;;  %v2514_v52 = vld [vmem:[%s3532_s3 + $0x1] ss:$0 sm:$0xff]  ;;  %s2936_s25 = scalar_lea.vmem %s2935_s19, 256 }
  0x1f   : > { %2685 = vmatprep.subr.mxu0 %v2992_v2  ;;  %2696 = vmatprep.subr.mxu1 %v2992_v2  ;;  %v592_v22 = vld [vmem:[%s3535_s6] sm:$0xff]  ;;  %v2526_v59 = vld [vmem:[%s3535_s6 + $0x38] sm:$0xff]  ;;  %v2525_v60 = vld [vmem:[%s3535_s6 + $0x30] sm:$0xff] }
  0x20   : > { %2686 = vmatpush3.msra.mxu0 %v425_v7  ;;  %2687 = vmatprep.mubr.msk.f32.mxu0 %vm2993_vm1, %v2992_v2  ;;  %v3199_v23 = vld [vmem:[%s422_s28] ss:$0 sm:$0xff]  ;;  %v2521_v54 = vld [vmem:[%s3534_s5 + $0x1] ss:$0 sm:$0xff]  ;;  %v2524_v61 = vld [vmem:[%s3535_s6 + $0x28] sm:$0xff]  ;;  %s415_s28 = scalar_lea.vmem [#allocation2], %s2497_s17 }
  0x21   : > { %2697 = vmatpush3.msra.mxu1 %v511_v8  ;;  %2698 = vmatprep.mubr.msk.f32.mxu1 %vm2993_vm1, %v2992_v2  ;;  %v2503_v33 = vld [vmem:[%s3536_s7] ss:$0 sm:$0xff]  ;;  %s2425_s15 = sshll.u32 %s415_s28, 4  ;;  %s2426_s15 = int_to_ptr.vmem [resolvable:$true] %s2425_s15 }
  0x22   : > { %2688 = vmatmul.mubr.msk.f32.vlgmr.msra.gmra.mxu0 %vm436_vm0, %v3148_v9  ;;  %2699 = vmatmul.mubr.msk.f32.vlgmr.msra.gmra.mxu1 %vm436_vm0, %v3148_v9  ;;  %v2509_v40 = vld [vmem:[%s3548_s2 + $0x20] sm:$0xff]  ;;  %s2930_s30 = scalar_lea.vmem %s2426_s15, 128  ;;  %p2937_p0 = scmp.lt.s32.totalorder %s2426_s15, %s2935_s19 }
  0x23   : > { %2712 = vmatprep.subr.mxu1 %v2992_v2  ;;  %2714 = vmatprep.mubr.msk.f32.mxu1 %vm2993_vm1, %v2992_v2  ;;  %v2516_v47 = vld [vmem:[%s3533_s4 + $0x20] sm:$0xff]  ;;  %p2931_p11 = scmp.ne.s32.totalorder %s2426_s15, %s2930_s30  ;;  %p2938_p1 = scmp.lt.s32.totalorder %s2936_s25, %s2930_s30 }
  0x24   : > { %2701 = vmatprep.subr.mxu0 %v2992_v2  ;;  %2709 = vmatprep.mubr.msk.f32.mxu0 %vm2993_vm1, %v2992_v2  ;;  %v2523_v62 = vld [vmem:[%s3535_s6 + $0x20] sm:$0xff] }
  0x25   : > { %2702 = vmatpush3.msra.mxu0 %v595_v19  ;;  %v2546_v19 = vld [vmem:[%s3533_s4 + $0x58] sm:$0xff]  ;;  %p2932_p12 = pnand %p2931_p11, %p3098_p5  ;;  %p2939_p2 = por %p2938_p1, %p2937_p0 }
  0x26   : > { %2703 = vmatprep.subr.mxu0 %v2992_v2 }
  0x27   : > { %2704 = vmatpush3.msra.mxu0 %v594_v20  ;;  %v2545_v20 = vld [vmem:[%s3533_s4 + $0x50] sm:$0xff]  ;;  %p2933_p13 = pneg %p2932_p12 }
  0x28   : > { %2705 = vmatprep.subr.mxu0 %v2992_v2 }
  0x29   : > { %2706 = vmatpush3.msra.mxu0 %v593_v21  ;;  %v2544_v21 = vld [vmem:[%s3533_s4 + $0x48] sm:$0xff]  ;;  %p2940_p3 = pnand %p2939_p2, %p2933_p13 }
  0x2a   : > { %2707 = vmatprep.subr.mxu0 %v2992_v2 }
  0x2b   : > { %2708 = vmatpush3.msra.mxu0 %v592_v22  ;;  %v2543_v22 = vld [vmem:[%s3533_s4 + $0x40] sm:$0xff] }
  0x2c   : > { %2710 = vmatmul.mubr.msk.f32.vlgmr.msra.gmra.mxu0 %vm436_vm0, %v3148_v9  ;;  %2722 = vmatprep.subr.mxu0 %v2992_v2 }
  0x2d   : > { %2730 = vmatprep.mubr.msk.f32.mxu0 %vm2993_vm1, %v2992_v2  ;;  %2723 = vmatpush3.msra.mxu0 %v2512_v35 }
  0x2e   : > { %2724 = vmatprep.subr.mxu0 %v2992_v2 }
  0x2f   : > { %2725 = vmatpush3.msra.mxu0 %v2511_v38  ;;  %v2541_v38 = vld [vmem:[%s3532_s3 + $0x2] ss:$0 sm:$0xff] }
  0x30   : > { %2726 = vmatprep.subr.mxu0 %v2992_v2 }
  0x31   : > { %2727 = vmatpush3.msra.mxu0 %v2510_v39 }
  0x32   : > { %2728 = vmatprep.subr.mxu0 %v2992_v2 }
  0x33   : > { %2729 = vmatpush3.msra.mxu0 %v2509_v40 }
  0x34   : > { %2731 = vmatmul.mubr.msk.f32.vlgmr.msra.gmra.mxu0 %vm436_vm0, %v3148_v9  ;;  %2744 = vmatprep.subr.mxu0 %v2992_v2 }
  0x35   : > { %2752 = vmatprep.mubr.msk.f32.mxu0 %vm2993_vm1, %v2992_v2  ;;  %2745 = vmatpush3.msra.mxu0 %v2526_v59 }
  0x36   : > { %2746 = vmatprep.subr.mxu0 %v2992_v2 }
  0x37   : > { %2747 = vmatpush3.msra.mxu0 %v2525_v60  ;;  %v2560_v60 = vld [vmem:[%s3537_s8 + $0x10] sm:$0xff] }
  0x38   : > { %2748 = vmatprep.subr.mxu0 %v2992_v2 }
  0x39   : > { %2749 = vmatpush3.msra.mxu0 %v2524_v61 }
  0x3a   : > { %2750 = vmatprep.subr.mxu0 %v2992_v2 }
  0x3b   : > { %2751 = vmatpush3.msra.mxu0 %v2523_v62 }
  0x3c   : > { %2753 = vmatmul.mubr.msk.f32.vlgmr.msra.gmra.mxu0 %vm436_vm0, %v3148_v9  ;;  %2765 = vmatprep.subr.mxu0 %v2992_v2 }
  0x3d   : > { %2767 = vmatprep.mubr.msk.f32.mxu0 %vm2993_vm1, %v2992_v2 }
  0xe2   : > { %v506_v12 = vpop.f32.mrf.mxu0  ;;  %v588_v13 = vpop.f32.mrf.mxu1 }
  0xe3   : > { %v507_v14 = vadd.f32 %v2499_v10, %v506_v12  ;;  %v589_v15 = vadd.f32 %v2501_v11, %v588_v13  ;;  %v2528_v10 = vld [vmem:[%s3536_s7 + $0x1] ss:$0 sm:$0xff] }
  0xe4   : > { %v2689_v16 = vpop.f32.mrf.mxu0  ;;  %v2700_v17 = vpop.f32.mrf.mxu1 }
  0xe5   : > { %v510_v18 = vmul.f32 0.35355338, %v507_v14  ;;  %2713 = vmatpush3.xpose.msk.msra.mxu1 %vm679_vm2, %v589_v15  ;;  %v2533_v14 = vld [vmem:[%s3537_s8 + $0x8] sm:$0xff] }
  0xe6   : > { %2717 = vmatprep.subr.mxu1 %v2992_v2  ;;  %2766 = vmatpush3.msra.mxu0 %v2533_v14 }
  0xe7   : > { %2775 = vmatprep.subr.mxu0 %v2992_v2 }
  0xe8   : > { %2715 = vmatmul.mubr.msk.f32.vlgmr.msra.gmra.mxu1 %vm679_vm2, %v510_v18  ;;  %v840_v18 = vld [vmem:[%s3537_s8] sm:$0xff] }
  0xe9   : > { %2719 = vmatprep.mubr.msk.f32.mxu1 %vm2993_vm1, %v2992_v2 }
  0xec   : > { %v669_v34 = vpop.f32.mrf.mxu0 }
  0xed   : > { %v670_v36 = vadd.f32 %v2503_v33, %v669_v34 }
  0xee   : > { %v2711_v37 = vpop.f32.mrf.mxu0 }
  0xef   : > { %2718 = vmatpush3.msra.mxu1 %v670_v36 }
  0xf0   : > { %2733 = vmatprep.subr.mxu1 %v2992_v2 }
  0xf4   : > { %v920_v48 = vpop.f32.mrf.mxu0 }
  0xf5   : > { %v921_v53 = vadd.f32 %v2514_v52, %v920_v48 }
  0xf6   : > { %v2732_v49 = vpop.f32.mrf.mxu0 }
  0xf7   : > { %v924_v57 = vmul.f32 0.35355338, %v921_v53 }
  0xfc   : > { %v1087_v11 = vpop.f32.mrf.mxu0 }
  0xfd   : > { %v1088_v12 = vadd.f32 %v2528_v10, %v1087_v11  ;;  %v2570_v10 = vld [vmem:[%s3533_s4 + $0x68] sm:$0xff]  ;;  %v2569_v11 = vld [vmem:[%s3533_s4 + $0x60] sm:$0xff] }
  0xfe   : > { %v2754_v13 = vpop.f32.mrf.mxu0 }
 0x1a8   : > { %v752_v24 = vpop.f32.mrf.mxu1 }
 0x1a9   : > { %v753_v25 = vadd.f32 %v3199_v23, %v752_v24  ;;  %v2539_v24 = vld [vmem:[%s3548_s2 + $0x58] sm:$0xff] }
 0x1aa   : > { %v2716_v26 = vpop.f32.mrf.mxu1 }
 0x1ab   : > { %v756_v27 = vsel %vm679_vm2, %v753_v25, -inf  ;;  %v2538_v26 = vld [vmem:[%s3548_s2 + $0x50] sm:$0xff] }
 0x1ac   : > { %757 = vmax.xlane.f32.xlu0 %v756_v27 }
 0x235   : > { %v758_v28 = vpop.xlane.xlu0 %757 }
 0x236   : > { %v759_v29 = vsub.f32 %v753_v25, %v758_v28  ;;  %v2537_v28 = vld [vmem:[%s3548_s2 + $0x48] sm:$0xff] }
 0x238   : > { %v760_v30 = vmul.f32 1.442695, %v759_v29 }
 0x23a   : > { %2912 = vpow2.f32 %v760_v30  ;;  %v2536_v30 = vld [vmem:[%s3548_s2 + $0x40] sm:$0xff] }
 0x247   : > { %v2913_v31 = vpop.eup %2912 }
 0x248   : > { %v762_v32 = vsel %vm679_vm2, %v2913_v31, 0.0 }
 0x249   : > { %763 = vadd.xlane.f32.xlu0 %v762_v32  ;;  %v2548_v32 = vld [vmem:[%s3534_s5 + $0x2] ss:$0 sm:$0xff] }
 0x2d2   : > { %v764_v41 = vpop.xlane.xlu0 %763 }
 0x2d3   : > { %2914 = vrcp.f32 %v764_v41 }
 0x2e0   : > { %v2915_v42 = vpop.eup %2914 }
 0x2e1   : > { %v766_v43 = vmul.f32 %v2915_v42, %v2913_v31 }
 0x2e3   : > { %2720 = vmatmul.mubr.msk.f32.vlgmr.msra.gmra.mxu1 %vm679_vm2, %v766_v43  ;;  %v2553_v43 = vld [vmem:[%s3535_s6 + $0x58] sm:$0xff] }
 0x2e4   : > { %2734 = vmatpush3.msra.mxu1 %v2519_v44  ;;  %2741 = vmatprep.mubr.msk.f32.mxu1 %vm2993_vm1, %v2992_v2  ;;  %v2552_v44 = vld [vmem:[%s3535_s6 + $0x50] sm:$0xff] }
 0x2e5   : > { %2735 = vmatprep.subr.mxu1 %v2992_v2 }
 0x2e6   : > { %2736 = vmatpush3.msra.mxu1 %v2518_v45  ;;  %v2551_v45 = vld [vmem:[%s3535_s6 + $0x48] sm:$0xff] }
 0x2e7   : > { %2737 = vmatprep.subr.mxu1 %v2992_v2 }
 0x2e8   : > { %2738 = vmatpush3.msra.mxu1 %v2517_v46  ;;  %v2550_v46 = vld [vmem:[%s3535_s6 + $0x40] sm:$0xff] }
 0x2e9   : > { %2739 = vmatprep.subr.mxu1 %v2992_v2 }
 0x2ea   : > { %2740 = vmatpush3.msra.mxu1 %v2516_v47 }
 0x2eb   : > { %2742 = vmatmul.mubr.msk.f32.vlgmr.msra.gmra.mxu1 %vm436_vm0, %v3148_v9  ;;  %2755 = vmatprep.subr.mxu1 %v2992_v2 }
 0x2ec   : > { %2757 = vmatprep.mubr.msk.f32.mxu1 %vm2993_vm1, %v2992_v2 }
 0x3a3   : > { %v836_v50 = vpop.f32.mrf.mxu1 }
 0x3a5   : > { %v2721_v51 = vpop.f32.mrf.mxu1 }
 0x3ab   : > { %v1004_v55 = vpop.f32.mrf.mxu1 }
 0x3ac   : > { %v1005_v56 = vadd.f32 %v2521_v54, %v1004_v55 }
 0x3ad   : > { %v2743_v58 = vpop.f32.mrf.mxu1 }
 0x3ae   : > { %2756 = vmatpush3.xpose.msk.msra.mxu1 %vm679_vm2, %v1005_v56  ;;  %v2555_v56 = vld [vmem:[%s3536_s7 + $0x2] ss:$0 sm:$0xff] }
 0x3af   : > { %2760 = vmatprep.subr.mxu1 %v2992_v2 }
 0x3b1   : > { %2758 = vmatmul.mubr.msk.f32.vlgmr.msra.gmra.mxu1 %vm679_vm2, %v924_v57 }
 0x3b2   : > { %2762 = vmatprep.mubr.msk.f32.mxu1 %vm2993_vm1, %v2992_v2  ;;  %2761 = vmatpush3.msra.mxu1 %v1088_v12 }
 0x3b3   : > { %2770 = vmatprep.subr.mxu1 %v2992_v2 }
 0x471   : > { %v1163_v63 = vpop.f32.mrf.mxu1 }
 0x472   : > { %v1164_v0 = vadd.f32 %v3199_v23, %v1163_v63 }
 0x473   : > { %v2759_v1 = vpop.f32.mrf.mxu1 }
 0x474   : > { %v1167_v3 = vsel %vm679_vm2, %v1164_v0, -inf  ;;  %v2564_v1 = vld [vmem:[%s3548_s2 + $0x70] sm:$0xff] }
 0x475   : > { %1168 = vmax.xlane.f32.xlu1 %v1167_v3  ;;  %v2563_v3 = vld [vmem:[%s3548_s2 + $0x68] sm:$0xff] }
 0x4fe   : > { %v1169_v4 = vpop.xlane.xlu1 %1168 }
 0x4ff   : > { %v1170_v5 = vsub.f32 %v1164_v0, %v1169_v4  ;;  %v2565_v0 = vld [vmem:[%s3548_s2 + $0x78] sm:$0xff]  ;;  %v2562_v4 = vld [vmem:[%s3548_s2 + $0x60] sm:$0xff]  ;;  %s2412_s2 = scalar_lea.sflag [#allocation3], %s413_s29 }
 0x501   : > { %v1171_v6 = vmul.f32 1.442695, %v1170_v5  ;;  %v2572_v5 = vld [vmem:[%s3533_s4 + $0x78] sm:$0xff] }
 0x503   : > { %2916 = vpow2.f32 %v1171_v6 }
 0x510   : > { %v2917_v7 = vpop.eup %2916 }
 0x511   : > { %v1173_v8 = vsel %vm679_vm2, %v2917_v7, 0.0 }
 0x512   : > { %1174 = vadd.xlane.f32.xlu1 %v1173_v8 }
 0x59b   : > { %v1175_v15 = vpop.xlane.xlu1 %1174 }
 0x59c   : > { %2918 = vrcp.f32 %v1175_v15 }
 0x5a9   : > { %v2919_v16 = vpop.eup %2918 }
 0x5aa   : > { %v1177_v17 = vmul.f32 %v2919_v16, %v2917_v7  ;;  %v2571_v7 = vld [vmem:[%s3533_s4 + $0x70] sm:$0xff] }
 0x5ac   : > { %2763 = vmatmul.mubr.msk.f32.vlgmr.msra.gmra.mxu1 %vm679_vm2, %v1177_v17 }
 0x5ad   : > { %2771 = vmatpush3.msra.mxu1 %v840_v18  ;;  %2772 = vmatprep.mubr.msk.f32.mxu1 %vm2993_vm1, %v2992_v2  ;;  %v2567_v18 = vld [vmem:[%s3532_s3 + $0x3] ss:$0 sm:$0xff] }
 0x5ae   : > { %2786 = vmatprep.subr.mxu1 %v2992_v2 }
 0x5b0   : > { %2773 = vmatmul.mubr.msk.f32.vlgmr.msra.gmra.mxu1 %vm679_vm2, %v836_v50 }
 0x5b1   : > { %2787 = vmatpush3.msra.mxu1 %v2546_v19  ;;  %2794 = vmatprep.mubr.msk.f32.mxu1 %vm2993_vm1, %v2992_v2 }
 0x5b2   : > { %2788 = vmatprep.subr.mxu1 %v2992_v2 }
 0x5b3   : > { %2789 = vmatpush3.msra.mxu1 %v2545_v20  ;;  %v2574_v20 = vld [vmem:[%s3534_s5 + $0x3] ss:$0 sm:$0xff] }
 0x5b4   : > { %2790 = vmatprep.subr.mxu1 %v2992_v2 }
 0x5b5   : > { %2791 = vmatpush3.msra.mxu1 %v2544_v21 }
 0x5b6   : > { %2792 = vmatprep.subr.mxu1 %v2992_v2 }
 0x5b7   : > { %2793 = vmatpush3.msra.mxu1 %v2543_v22 }
 0x5b8   : > { %2795 = vmatmul.mubr.msk.f32.vlgmr.msra.gmra.mxu1 %vm436_vm0, %v3148_v9  ;;  %2808 = vmatprep.subr.mxu1 %v2992_v2 }
 0x5b9   : > { %2810 = vmatprep.mubr.msk.f32.mxu1 %vm2993_vm1, %v2992_v2 }
 0x66c   : > { %v1247_v25 = vpop.f32.mrf.mxu1 }
 0x66d   : > { %2768 = vmatmul.mubr.msk.f32.vlgmr.msra.gmra.mxu0 %vm679_vm2, %v1247_v25 }
 0x66e   : > { %2776 = vmatpush3.msra.mxu0 %v2539_v24  ;;  %v2764_v27 = vpop.f32.mrf.mxu1  ;;  %2783 = vmatprep.mubr.msk.f32.mxu0 %vm2993_vm1, %v2992_v2 }
 0x66f   : > { %2777 = vmatprep.subr.mxu0 %v2992_v2  ;;  %v2578_v27 = vld [vmem:[%s3535_s6 + $0x70] sm:$0xff] }
 0x670   : > { %2778 = vmatpush3.msra.mxu0 %v2538_v26  ;;  %v3336_v29 = vpop.f32.mrf.mxu1  ;;  %v2579_v26 = vld [vmem:[%s3535_s6 + $0x78] sm:$0xff] }
 0x671   : > { %2779 = vmatprep.subr.mxu0 %v2992_v2 }
 0x672   : > { %2780 = vmatpush3.msra.mxu0 %v2537_v28  ;;  %v2774_v31 = vpop.f32.mrf.mxu1  ;;  %v2577_v28 = vld [vmem:[%s3535_s6 + $0x68] sm:$0xff] }
 0x673   : > { %2781 = vmatprep.subr.mxu0 %v2992_v2 }
 0x674   : > { %2782 = vmatpush3.msra.mxu0 %v2536_v30 }
 0x675   : > { %2784 = vmatmul.mubr.msk.f32.vlgmr.msra.gmra.mxu0 %vm436_vm0, %v3148_v9  ;;  %2797 = vmatprep.subr.mxu0 %v2992_v2 }
 0x676   : > { %2805 = vmatprep.mubr.msk.f32.mxu0 %vm2993_vm1, %v2992_v2  ;;  %2798 = vmatpush3.msra.mxu0 %v2553_v43 }
 0x677   : > { %2799 = vmatprep.subr.mxu0 %v2992_v2 }
 0x678   : > { %v1562_v33 = vpop.f32.mrf.mxu1  ;;  %2800 = vmatpush3.msra.mxu0 %v2552_v44 }
 0x679   : > { %v1563_v34 = vadd.f32 %v2548_v32, %v1562_v33  ;;  %2801 = vmatprep.subr.mxu0 %v2992_v2 }
 0x67a   : > { %v2796_v35 = vpop.f32.mrf.mxu1  ;;  %2802 = vmatpush3.msra.mxu0 %v2551_v45 }
 0x67b   : > { %2809 = vmatpush3.xpose.msk.msra.mxu1 %vm679_vm2, %v1563_v34  ;;  %2803 = vmatprep.subr.mxu0 %v2992_v2 }
 0x67c   : > { %2813 = vmatprep.subr.mxu1 %v2992_v2  ;;  %2804 = vmatpush3.msra.mxu0 %v2550_v46 }
 0x67d   : > { %2806 = vmatmul.mubr.msk.f32.vlgmr.msra.gmra.mxu0 %vm436_vm0, %v3148_v9  ;;  %2818 = vmatprep.subr.mxu0 %v2992_v2 }
 0x67e   : > { %2820 = vmatprep.mubr.msk.f32.mxu0 %vm2993_vm1, %v2992_v2  ;;  %2819 = vmatpush3.msra.mxu0 %v2560_v60 }
 0x67f   : > { %2834 = vmatprep.subr.mxu0 %v2992_v2 }
 0x72d   : > { %v3353_v36 = vpop.f32.mrf.mxu0 }
 0x72e   : > { %v1396_v14 = vadd.f32 %v3336_v29, %v3353_v36  ;;  %v2576_v29 = vld [vmem:[%s3535_s6 + $0x60] sm:$0xff] }
 0x72f   : > { %v2769_v37 = vpop.f32.mrf.mxu0 }
 0x735   : > { %v1478_v39 = vpop.f32.mrf.mxu0 }
 0x736   : > { %v1479_v40 = vadd.f32 %v2541_v38, %v1478_v39  ;;  %v2581_v39 = vld [vmem:[%s3536_s7 + $0x3] ss:$0 sm:$0xff] }
 0x737   : > { %v2785_v41 = vpop.f32.mrf.mxu0 }
 0x738   : > { %v1482_v42 = vmul.f32 0.35355338, %v1479_v40 }
 0x73a   : > { %2811 = vmatmul.mubr.msk.f32.vlgmr.msra.gmra.mxu1 %vm679_vm2, %v1482_v42 }
 0x73b   : > { %2815 = vmatprep.mubr.msk.f32.mxu1 %vm2993_vm1, %v2992_v2 }
 0x73d   : > { %v1645_v57 = vpop.f32.mrf.mxu0 }
 0x73e   : > { %v1646_v58 = vadd.f32 %v2555_v56, %v1645_v57 }
 0x73f   : > { %v2807_v59 = vpop.f32.mrf.mxu0 }
 0x740   : > { %2814 = vmatpush3.msra.mxu1 %v1646_v58 }
 0x741   : > { %2823 = vmatprep.subr.mxu1 %v2992_v2 }
 0x7fa   : > { %v1721_v47 = vpop.f32.mrf.mxu1 }
 0x7fb   : > { %v1722_v48 = vadd.f32 %v3199_v23, %v1721_v47 }
 0x7fc   : > { %v2812_v49 = vpop.f32.mrf.mxu1 }
 0x7fd   : > { %v1725_v50 = vsel %vm679_vm2, %v1722_v48, -inf }
 0x7fe   : > { %1726 = vmax.xlane.f32.xlu0 %v1725_v50 }
 0x887   : > { %v1727_v51 = vpop.xlane.xlu0 %1726 }
 0x888   : > { %v1728_v52 = vsub.f32 %v1722_v48, %v1727_v51  ;;  %v2588_v48 = vld [vmem:[%s3538_s9] ss:$0 sm:$0xff] }
 0x88a   : > { %v1729_v53 = vmul.f32 1.442695, %v1728_v52 }
 0x88c   : > { %2920 = vpow2.f32 %v1729_v53 }
 0x899   : > { %v2921_v54 = vpop.eup %2920 }
 0x89a   : > { %v1731_v55 = vsel %vm679_vm2, %v2921_v54, 0.0 }
 0x89b   : > { %1732 = vadd.xlane.f32.xlu1 %v1731_v55 }
 0x924   : > { %v1733_v61 = vpop.xlane.xlu1 %1732 }
 0x925   : > { %2922 = vrcp.f32 %v1733_v61 }
 0x932   : > { %v2923_v62 = vpop.eup %2922 }
 0x933   : > { %v1735_v63 = vmul.f32 %v2923_v62, %v2921_v54 }
 0x935   : > { %2816 = vmatmul.mubr.msk.f32.vlgmr.msra.gmra.mxu1 %vm679_vm2, %v1735_v63 }
 0x936   : > { %2831 = vmatprep.mubr.msk.f32.mxu1 %vm2993_vm1, %v2992_v2  ;;  %2824 = vmatpush3.msra.mxu1 %v2565_v0  ;;  %v2590_v0 = vld [vmem:[%s3540_s11] ss:$0 sm:$0xff] }
 0x937   : > { %2825 = vmatprep.subr.mxu1 %v2992_v2 }
 0x938   : > { %2826 = vmatpush3.msra.mxu1 %v2564_v1 }
 0x939   : > { %2827 = vmatprep.subr.mxu1 %v2992_v2 }
 0x93a   : > { %2828 = vmatpush3.msra.mxu1 %v2563_v3 }
 0x93b   : > { %2829 = vmatprep.subr.mxu1 %v2992_v2 }
 0x93c   : > { %2830 = vmatpush3.msra.mxu1 %v2562_v4 }
 0x93d   : > { %2832 = vmatmul.mubr.msk.f32.vlgmr.msra.gmra.mxu1 %vm436_vm0, %v3148_v9  ;;  %2845 = vmatprep.subr.mxu1 %v2992_v2 }
 0x93e   : > { %2853 = vmatprep.mubr.msk.f32.mxu1 %vm2993_vm1, %v2992_v2  ;;  %2846 = vmatpush3.msra.mxu1 %v2579_v26 }
 0x93f   : > { %2847 = vmatprep.subr.mxu1 %v2992_v2 }
 0x940   : > { %2848 = vmatpush3.msra.mxu1 %v2578_v27 }
 0x941   : > { %2849 = vmatprep.subr.mxu1 %v2992_v2 }
 0x942   : > { %2850 = vmatpush3.msra.mxu1 %v2577_v28 }
 0x943   : > { %2851 = vmatprep.subr.mxu1 %v2992_v2 }
 0x944   : > { %2852 = vmatpush3.msra.mxu1 %v2576_v29 }
 0x945   : > { %2854 = vmatmul.mubr.msk.f32.vlgmr.msra.gmra.mxu1 %vm436_vm0, %v3148_v9  ;;  %2866 = vmatprep.subr.mxu1 %v2992_v2 }
 0x946   : > { %2868 = vmatprep.mubr.msk.f32.mxu1 %vm2993_vm1, %v2992_v2 }
 0x9f5   : > { %v1805_v6 = vpop.f32.mrf.mxu1 }
 0x9f6   : > { %2821 = vmatmul.mubr.msk.f32.vlgmr.msra.gmra.mxu0 %vm679_vm2, %v1805_v6 }
 0x9f7   : > { %2835 = vmatpush3.msra.mxu0 %v2572_v5  ;;  %v2817_v8 = vpop.f32.mrf.mxu1  ;;  %2842 = vmatprep.mubr.msk.f32.mxu0 %vm2993_vm1, %v2992_v2 }
 0x9f8   : > { %2836 = vmatprep.subr.mxu0 %v2992_v2 }
 0x9f9   : > { %2837 = vmatpush3.msra.mxu0 %v2571_v7 }
 0x9fa   : > { %2838 = vmatprep.subr.mxu0 %v2992_v2 }
 0x9fb   : > { %2839 = vmatpush3.msra.mxu0 %v2570_v10 }
 0x9fc   : > { %2840 = vmatprep.subr.mxu0 %v2992_v2 }
 0x9fd   : > { %2841 = vmatpush3.msra.mxu0 %v2569_v11  ;;  %v1964_v12 = vpop.f32.mrf.mxu1 }
 0x9fe   : > { %2843 = vmatmul.mubr.msk.f32.vlgmr.msra.gmra.mxu0 %vm436_vm0, %v3148_v9  ;;  %2856 = vmatprep.subr.mxu0 %v2992_v2  ;;  %v1965_v19 = vadd.f32 %v2567_v18, %v1964_v12 }
 0x9ff   : > { %2858 = vmatprep.mubr.msk.f32.mxu0 %vm2993_vm1, %v2992_v2  ;;  %v2833_v13 = vpop.f32.mrf.mxu1 }
 0xa00   : > { %v1968_v24 = vmul.f32 0.35355338, %v1965_v19 }
 0xab6   : > { %v1880_v15 = vpop.f32.mrf.mxu0 }
 0xab7   : > { %v1884_v16 = vadd.f32 %v1880_v15, %v1396_v14 }
 0xab8   : > { %v2822_v17 = vpop.f32.mrf.mxu0 }
 0xabe   : > { %v2048_v21 = vpop.f32.mrf.mxu0 }
 0xabf   : > { %v2049_v22 = vadd.f32 %v2574_v20, %v2048_v21 }
 0xac0   : > { %v2844_v25 = vpop.f32.mrf.mxu0 }
 0xac1   : > { %2857 = vmatpush3.xpose.msk.msra.mxu0 %vm679_vm2, %v2049_v22 }
 0xac2   : > { %2861 = vmatprep.subr.mxu0 %v2992_v2 }
 0xac4   : > { %2859 = vmatmul.mubr.msk.f32.vlgmr.msra.gmra.mxu0 %vm679_vm2, %v1968_v24 }
 0xac5   : > { %2863 = vmatprep.mubr.msk.f32.mxu0 %vm2993_vm1, %v2992_v2  ;;  %v2131_v2 = vpop.f32.mrf.mxu1 }
 0xac6   : > { %v2132_v40 = vadd.f32 %v2581_v39, %v2131_v2 }
 0xac7   : > { %v2855_v41 = vpop.f32.mrf.mxu1 }
 0xac8   : > { %2862 = vmatpush3.msra.mxu0 %v2132_v40 }
 0xb84   : > { %v2207_v30 = vpop.f32.mrf.mxu0 }
 0xb85   : > { %v2208_v31 = vadd.f32 %v3199_v23, %v2207_v30  ;;  %v2586_v23 = vld [vmem:[%s3537_s8 + $0x18] sm:$0xff] }
 0xb86   : > { %v2860_v32 = vpop.f32.mrf.mxu0  ;;  %2867 = vmatpush3.msra.mxu1 %v2586_v23 }
 0xb87   : > { %v2211_v33 = vsel %vm679_vm2, %v2208_v31, -inf }
 0xb88   : > { %2212 = vmax.xlane.f32.xlu0 %v2211_v33 }
 0xc11   : > { %v2213_v34 = vpop.xlane.xlu0 %2212 }
 0xc12   : > { %v2214_v35 = vsub.f32 %v2208_v31, %v2213_v34 }
 0xc14   : > { %v2215_v36 = vmul.f32 1.442695, %v2214_v35 }
 0xc16   : > { %2924 = vpow2.f32 %v2215_v36 }
 0xc23   : > { %v2925_v37 = vpop.eup %2924 }
 0xc24   : > { %v2217_v38 = vsel %vm679_vm2, %v2925_v37, 0.0 }
 0xc25   : > { %2218 = vadd.xlane.f32.xlu1 %v2217_v38 }
 0xcae   : > { %v2219_v42 = vpop.xlane.xlu1 %2218 }
 0xcaf   : > { %2926 = vrcp.f32 %v2219_v42 }
 0xcbc   : > { %v2927_v43 = vpop.eup %2926 }
 0xcbd   : > { %v2221_v44 = vmul.f32 %v2927_v43, %v2925_v37 }
 0xcbf   : > { %2864 = vmatmul.mubr.msk.f32.vlgmr.msra.gmra.mxu0 %vm679_vm2, %v2221_v44 }
 0xd7f   : > { %v2291_v45 = vpop.f32.mrf.mxu0 }
 0xd80   : > { %2869 = vmatmul.mubr.msk.f32.vlgmr.msra.gmra.mxu1 %vm679_vm2, %v2291_v45 }
 0xd81   : > { %v2865_v46 = vpop.f32.mrf.mxu0 }
 0xe40   : > { %v2366_v47 = vpop.f32.mrf.mxu1 }
 0xe41   : > { %v2370_v49 = vadd.f32 %v2366_v47, %v1884_v16 }
 0xe42   : > { %v2870_v50 = vpop.f32.mrf.mxu1 }
 0xe43   : > { %v2378_v51 = vadd.f32 %v2588_v48, %v2370_v49 }
 0xe45   : > { %v2379_v52 = vadd.f32 %v2378_v51, %v3148_v9  ;;  %v2589_v9 = vld [vmem:[%s3539_s10] ss:$0 sm:$0xff] }
 0xe47   : > { %v2380_v53 = vsel %vm436_vm0, %v2379_v52, 0.0 }
 0xe48   : > { %2381 = vadd.xlane.f32.xlu0 %v2380_v53 }
 0xed1   : > { %v2382_v54 = vpop.xlane.xlu0 %2381 }
 0xed2   : > { %v2384_v55 = vmul.f32 0.03125, %v2382_v54 }
 0xed4   : > { %v2385_v56 = vsub.f32 %v2379_v52, %v2384_v55 }
 0xed6   : > { %v2386_v57 = vmul.f32 %v2385_v56, %v2385_v56 }
 0xed8   : > { %v2387_v58 = vsel %vm436_vm0, %v2386_v57, 0.0 }
 0xed9   : > { %2388 = vadd.xlane.f32.xlu1 %v2387_v58 }
 0xf62   : > { %v2389_v59 = vpop.xlane.xlu1 %2388 }
 0xf63   : > { %v2390_v60 = vmul.f32 0.03125, %v2389_v59 }
 0xf65   : > { %v2391_v61 = vadd.f32 1e-12, %v2390_v60 }
 0xf67   : > { %2928 = vrsqrt.f32 %v2391_v61 }
 0xf74   : > { %v2929_v62 = vpop.eup %2928 }
 0xf75   : > { %v2393_v63 = vmul.f32 %v2929_v62, %v2385_v56 }
 0xf77   : > { %v2401_v1 = vmul.f32 %v2589_v9, %v2393_v63 }
 0xf79   : > { %v2409_v3 = vadd.f32 %v2590_v0, %v2401_v1 }
 0xf7b   : > { %2410 = vst.msk [vmem:[%s415_s28] sm:$0xff] %vm436_vm0, %v2409_v3 }
 0xf7c   : > { %2943 = shalt.err (!%p2940_p3)
}
 0xf7d   : > { %s2944_s0 = scalar_lea.hbm %s2423_s1, 128  ;;  %s2948_s20 = scalar_lea.hbm %s3541_s12, 256 }
 0xf7e   : > { %p2945_p4 = scmp.ne.s32.totalorder %s2423_s1, %s2944_s0  ;;  %p2949_p9 = scmp.lt.s32.totalorder %s2423_s1, %s3541_s12 }
 0xf7f   : > { %p2950_p10 = scmp.lt.s32.totalorder %s2948_s20, %s2944_s0 }
 0xf80   : > { %p2946_p7 = pnand %p2945_p4, %p3098_p5 }
 0xf81   : > { %p2951_p11 = por %p2950_p10, %p2949_p9 }
 0xf82   : > { %p2947_p8 = pneg %p2946_p7 }
 0xf84   : > { %p2952_p12 = pnand %p2951_p11, %p2947_p8 }
 0xf86   : > { %2955 = shalt.err (!%p2952_p12)
}
 0xf87   : > { %2871 = dma.vmem_to_hbm [thread:$0]  (%p3098_p5), %s2426_s15, 128, %s2423_s1, %s2412_s2  }
 0xf88 PF: > { %p2877_p13 = scmp.ge.s32.totalorder %s2990_s24, 2  ;;  %s2437_s16 = sand.u32 1, %s2978_s21  }
 0xf89   : > { %s2438_s30 = scalar_lea.sflag [#allocation3], %s2437_s16 }
 0xf8a   : > { %p2874_p0 = pnand %p2877_p13, %p3102_p6 }
 0xf8c   : > { %p2875_p1 = pneg %p2874_p0 }
 0xf8e   : > { %2973 = dma.done.wait (%p2875_p1), %s2438_s30, 128  }
 0xf8f   : > { %2975 = vsyncadd (%p2875_p1), %s2438_s30, 4294967168  ;;  %s3551_s18 = sld [smem:[#allocation5_spill]]  ;;  %p22_p2 = scmp.ge.s32.totalorder %s3085_s27, 4  }
 0xf90   : > { %s3552_s21 = smov %s2982_s22  ;;  %s3553_s22 = smov %s2986_s23 }
 0xf91   : > { %s3555_s24 = smov %s3085_s27  ;;  %24 = sbr.rel (!%p22_p2) target bundleno = 7 (0x7), region = 127 }
 0xf95   : > { %s3554_s23 = smov %s3551_s18 }
 0xf96   :  { %2443 = vsyncpa [#allocation3], 1 }
 0xf97   :  { %2445 = vsyncpa [#allocation3 + $0x1], 1 }

</bundles_post_ra>
